<compile_context>
chip_gen: v7x
topology: tpu7x:2x2x1
jax: 0.10.0
libtpu: 0.0.40
codegen_flags: <defaults>
</compile_context>

<pallas_src>
import functools

import jax
import jax.numpy as jnp
from jax.experimental import pallas as pl
from jax.experimental.pallas import tpu as pltpu

_EPS = 1e-5  # PyTorch nn.LayerNorm default

# Sublane packing per itemsize (f32 -> 8 rows/vreg, bf16 -> 16, int8/fp8 -> 32).
_SUBLANE = {4: 8, 2: 16, 1: 32}

# VMEM budget for the double-buffered (input + output) row tiles.  Conservative
# enough to fit every generation's default scoped limit with headroom.
_TILE_VMEM_BUDGET = 8 * 1024 * 1024
# Explicit scoped-VMEM limit: > v5e's 16 MiB default, == v6e/v7x defaults.
_VMEM_LIMIT_BYTES = 32 * 1024 * 1024


def _round_up(x, m):
    return ((x + m - 1) // m) * m


def _choose_tile_rows(rows, d, itemsize):
    """Pick the largest row tile that fits the VMEM budget, sublane-aligned."""
    sub = _SUBLANE.get(itemsize, 8)
    # 2x double-buffered input tile + 2x double-buffered output tile.
    max_rows = _TILE_VMEM_BUDGET // max(1, 4 * d * itemsize)
    max_rows = max(sub, (max_rows // sub) * sub)
    tile = min(1024, max_rows)
    # Don't exceed the (sublane-rounded) total row count.
    rows_r = _round_up(rows, sub)
    tile = min(tile, rows_r)
    # v7x shards the "parallel" grid axis over 2 TensorCores: keep >= 4 grid
    # steps whenever that still leaves >= 256-row tiles.
    if rows_r >= 4 * 256:
        tile = min(tile, max(256, _round_up(rows_r // 4, sub)))
    return tile


def _layernorm_kernel(x_ref, g_ref, b_ref, o_ref):
    # x_ref: (tile_rows, D) block; g_ref / b_ref: (1, D), constant index_map so
    # they are DMA'd once and broadcast a single time per tile.
    x = x_ref[...].astype(jnp.float32)
    mean = jnp.mean(x, axis=-1, keepdims=True)
    centered = x - mean
    var = jnp.mean(centered * centered, axis=-1, keepdims=True)
    inv = jax.lax.rsqrt(var + _EPS)
    y = centered * inv
    y = y * g_ref[...].astype(jnp.float32) + b_ref[...].astype(jnp.float32)
    o_ref[...] = y.astype(o_ref.dtype)


def _layernorm_xla(x, gamma, beta):
    """Plain-XLA fallback for lane-sparse D (Pallas would be overhead-bound)."""
    xf = x.astype(jnp.float32)
    mean = jnp.mean(xf, axis=-1, keepdims=True)
    var = jnp.mean((xf - mean) ** 2, axis=-1, keepdims=True)
    y = (xf - mean) * jax.lax.rsqrt(var + _EPS) * gamma + beta
    return y.astype(x.dtype)


def _layernorm_pallas_2d(x2, gamma2, beta2, tile_rows):
    rows, d = x2.shape
    grid = (pl.cdiv(rows, tile_rows),)  # last partial block store is masked
    return pl.pallas_call(
        _layernorm_kernel,
        out_shape=jax.ShapeDtypeStruct((rows, d), x2.dtype),
        grid_spec=pltpu.PrefetchScalarGridSpec(
            num_scalar_prefetch=0,
            grid=grid,
            in_specs=[
                pl.BlockSpec((tile_rows, d), lambda i: (i, 0)),
                pl.BlockSpec((1, d), lambda i: (0, 0)),
                pl.BlockSpec((1, d), lambda i: (0, 0)),
            ],
            out_specs=pl.BlockSpec((tile_rows, d), lambda i: (i, 0)),
        ),
        compiler_params=pltpu.CompilerParams(
            dimension_semantics=("parallel",),
            vmem_limit_bytes=_VMEM_LIMIT_BYTES,
        ),
    )(x2, gamma2, beta2)


@jax.jit
def layernorm(x, gamma, beta):
    """LayerNorm over the last dim of x (any leading shape)."""
    orig_shape = x.shape
    d = orig_shape[-1]
    rows = 1
    for s in orig_shape[:-1]:
        rows *= s

    # Lane-sparse feature dim -> masked partial stores + overhead-dominated
    # pallas_call; let XLA fuse it instead.
    if d % 128 != 0 or rows == 0:
        return _layernorm_xla(x, gamma, beta)

    itemsize = jnp.dtype(x.dtype).itemsize
    tile_rows = _choose_tile_rows(rows, d, itemsize)

    x2 = x.reshape(rows, d)
    out = _layernorm_pallas_2d(x2, gamma.reshape(1, d), beta.reshape(1, d),
                               tile_rows)
    return out.reshape(orig_shape)


class PreNormPallas:
    """JAX/Pallas equivalent of the PyTorch PreNorm module."""

    def __init__(self, dim, fn, context_dim=None):
        self.fn = fn
        # nn.LayerNorm default init: weight=1, bias=0 (deterministic).
        self.norm_gamma = jnp.ones((dim,), jnp.float32)
        self.norm_beta = jnp.zeros((dim,), jnp.float32)
        if context_dim is not None:
            self.ctx_gamma = jnp.ones((context_dim,), jnp.float32)
            self.ctx_beta = jnp.zeros((context_dim,), jnp.float32)
        else:
            self.ctx_gamma = None
            self.ctx_beta = None

    def __call__(self, x, **kwargs):
        x = layernorm(x, self.norm_gamma, self.norm_beta)
        if self.ctx_gamma is not None:
            context = kwargs["context"]
            normed_context = layernorm(context, self.ctx_gamma, self.ctx_beta)
            kwargs = dict(kwargs, context=normed_context)
        return self.fn(x, **kwargs)


def _reference_layernorm(x, gamma, beta):
    mean = jnp.mean(x, axis=-1, keepdims=True)
    var = jnp.mean((x - mean) ** 2, axis=-1, keepdims=True)
    return (x - mean) / jnp.sqrt(var + _EPS) * gamma + beta


if __name__ == "__main__":
    key = jax.random.PRNGKey(0)
    k_x, k_ctx, k_w1, k_w2 = jax.random.split(key, 4)

    # Small but lane-dense shapes (D, Dc multiples of 128) so both LayerNorms
    # exercise the Pallas kernel.
    B, N, D, Dc = 2, 16, 128, 256
    x = jax.random.normal(k_x, (B, N, D), jnp.float32)
    context = jax.random.normal(k_ctx, (B, N, Dc), jnp.float32)

    # A simple wrapped fn (the "fn" argument of PreNorm): plain-JAX glue that
    # consumes the Pallas-normalized x and context.
    w1 = jax.random.normal(k_w1, (D, D), jnp.float32) * 0.02
    w2 = jax.random.normal(k_w2, (Dc, D), jnp.float32) * 0.02

    def fn(x, context=None):
        out = x @ w1
        if context is not None:
            out = out + context @ w2
        return out

    prenorm = PreNormPallas(D, fn, context_dim=Dc)
    out = prenorm(x, context=context)
    out = jax.block_until_ready(out)

    # Sanity check against a pure-JAX reference.
    ref_x = _reference_layernorm(x, prenorm.norm_gamma, prenorm.norm_beta)
    ref_c = _reference_layernorm(context, prenorm.ctx_gamma, prenorm.ctx_beta)
    ref_out = fn(ref_x, context=ref_c)
    assert out.shape == (B, N, D)
    assert jnp.allclose(out, ref_out, atol=1e-4, rtol=1e-4)

    print("KERNEL_OK")
</pallas_src>

<mosaic_0001>
module attributes {stable_mosaic.version = 11 : i64} {
  func.func @_layernorm_kernel(%arg0: i32, %arg1: memref<32x128xf32, #tpu.memory_space<vmem>>, %arg2: memref<1x128xf32, #tpu.memory_space<vmem>>, %arg3: memref<1x128xf32, #tpu.memory_space<vmem>>, %arg4: memref<32x128xf32, #tpu.memory_space<vmem>>) attributes {dimension_semantics = [#tpu.dimension_semantics<parallel>], iteration_bounds = array<i64: 1>, scalar_prefetch = 0 : i64, scratch_operands = 0 : i64, tpu.core_type = #tpu.core_type<tc>, window_params = [{transform_indices = @transform_0, window_bounds = array<i64: 32, 128>}, {pipeline_mode = #tpu.pipeline_mode<synchronous>, transform_indices = @transform_1, window_bounds = array<i64: 1, 128>}, {pipeline_mode = #tpu.pipeline_mode<synchronous>, transform_indices = @transform_2, window_bounds = array<i64: 1, 128>}, {transform_indices = @transform_3, window_bounds = array<i64: 32, 128>}]} {
    %c0 = arith.constant 0 : index
    %c0_0 = arith.constant 0 : index
    %0 = vector.load %arg1[%c0, %c0_0] : memref<32x128xf32, #tpu.memory_space<vmem>>, vector<32x128xf32>
    %cst = arith.constant dense<0.000000e+00> : vector<32xf32>
    %1 = vector.multi_reduction <add>, %0, %cst [1] : vector<32x128xf32> to vector<32xf32>
    %2 = vector.shape_cast %1 : vector<32xf32> to vector<32x1xf32>
    %cst_1 = arith.constant 1.280000e+02 : f32
    %3 = vector.broadcast %cst_1 : f32 to vector<32x1xf32>
    %4 = arith.divf %2, %3 : vector<32x1xf32>
    %5 = vector.broadcast %4 : vector<32x1xf32> to vector<32x128xf32>
    %6 = arith.subf %0, %5 : vector<32x128xf32>
    %7 = arith.mulf %6, %6 : vector<32x128xf32>
    %cst_2 = arith.constant dense<0.000000e+00> : vector<32xf32>
    %8 = vector.multi_reduction <add>, %7, %cst_2 [1] : vector<32x128xf32> to vector<32xf32>
    %9 = vector.shape_cast %8 : vector<32xf32> to vector<32x1xf32>
    %cst_3 = arith.constant 1.280000e+02 : f32
    %10 = vector.broadcast %cst_3 : f32 to vector<32x1xf32>
    %11 = arith.divf %9, %10 : vector<32x1xf32>
    %cst_4 = arith.constant 9.99999974E-6 : f32
    %12 = vector.broadcast %cst_4 : f32 to vector<32x1xf32>
    %13 = arith.addf %11, %12 : vector<32x1xf32>
    %14 = math.rsqrt %13 : vector<32x1xf32>
    %15 = vector.broadcast %14 : vector<32x1xf32> to vector<32x128xf32>
    %16 = arith.mulf %6, %15 : vector<32x128xf32>
    %c0_5 = arith.constant 0 : index
    %c0_6 = arith.constant 0 : index
    %17 = vector.load %arg2[%c0_5, %c0_6] : memref<1x128xf32, #tpu.memory_space<vmem>>, vector<1x128xf32>
    %18 = vector.broadcast %17 : vector<1x128xf32> to vector<32x128xf32>
    %19 = arith.mulf %16, %18 : vector<32x128xf32>
    %c0_7 = arith.constant 0 : index
    %c0_8 = arith.constant 0 : index
    %20 = vector.load %arg3[%c0_7, %c0_8] : memref<1x128xf32, #tpu.memory_space<vmem>>, vector<1x128xf32>
    %21 = vector.broadcast %20 : vector<1x128xf32> to vector<32x128xf32>
    %22 = arith.addf %19, %21 : vector<32x128xf32>
    %c0_9 = arith.constant 0 : index
    %c0_10 = arith.constant 0 : index
    %23 = vector.load %arg4[%c0_9, %c0_10] : memref<32x128xf32, #tpu.memory_space<vmem>>, vector<32x128xf32>
    tpu.vector_store %arg4[%c0_9, %c0_10], %22 {strides = array<i32>} : memref<32x128xf32, #tpu.memory_space<vmem>>, vector<32x128xf32>,
    return
  }
  func.func @transform_0(%arg0: i32) -> (i32, i32) {
    %c0_i32 = arith.constant 0 : i32
    %c0_i32_0 = arith.constant 0 : i32
    return %arg0, %c0_i32 : i32, i32
  }
  func.func @transform_1(%arg0: i32) -> (i32, i32) {
    %c0_i32 = arith.constant 0 : i32
    %c0_i32_0 = arith.constant 0 : i32
    %c0_i32_1 = arith.constant 0 : i32
    return %c0_i32, %c0_i32_0 : i32, i32
  }
  func.func @transform_2(%arg0: i32) -> (i32, i32) {
    %c0_i32 = arith.constant 0 : i32
    %c0_i32_0 = arith.constant 0 : i32
    %c0_i32_1 = arith.constant 0 : i32
    return %c0_i32, %c0_i32_0 : i32, i32
  }
  func.func @transform_3(%arg0: i32) -> (i32, i32) {
    %c0_i32 = arith.constant 0 : i32
    %c0_i32_0 = arith.constant 0 : i32
    return %arg0, %c0_i32 : i32, i32
  }
}

</mosaic_0001>

<bundles_post_ra>
// kernel: layernorm.1
= control target key start
LH: loop header
LB: loop body
LE: loop exit
PB: predicated region body
PF: predicated region fallthrough
CT: control target
= control target key end

     0   :  { %8 = vsyncpa [#allocation3], 0  ;;  %s243_s0 = inlined_call_operand.hbm [shape: f32[32,128], index: 0, kind: input, shape index: {}]   ;;  %s244_s1 = inlined_call_operand.vmem [shape: f32[1,128], index: 1, kind: input, shape index: {}]   ;;  %s245_s2 = inlined_call_operand.vmem [shape: f32[1,128], index: 2, kind: input, shape index: {}]   ;;  %s246_s3 = inlined_call_operand.hbm [shape: f32[32,128], index: 3, kind: output, shape index: {}]  }
   0x1   :  { %9 = vsyncpa [#allocation4], 0  ;;  %s183_s12 = smov [#allocation2]   ;;  %s135_s16 = scalar_lea.hbm %s243_s0, 512 }
   0x2   :  { %s15_s13 = sshll.u32 %s183_s12, 4  ;;  %p136_p0 = scmp.ne.s32.totalorder %s243_s0, %s135_s16  ;;  %s16_s13 = int_to_ptr.vmem [resolvable:$true] %s15_s13 }
   0x3   :  { %p139_p1 = scmp.lt.u32.totalorder %s135_s16, %s243_s0 }
   0x5   :  { %p141_p2 = pnand %p139_p1, %p136_p0 }
   0x7   :  { %144 = shalt.err (!%p141_p2)
}
   0x8   :  { %s145_s21 = scalar_lea.vmem %s16_s13, 512  ;;  %p150_p4 = scmp.lt.s32.totalorder %s16_s13, %s16_s13 }
   0x9   :  { %p146_p3 = scmp.ne.s32.totalorder %s16_s13, %s145_s21  ;;  %p151_p5 = scmp.lt.s32.totalorder %s145_s21, %s145_s21 }
   0xb   :  { %p152_p6 = por %p151_p5, %p150_p4 }
   0xd   :  { %p153_p7 = pnand %p152_p6, %p146_p3 }
   0xf   :  { %156 = shalt.err (!%p153_p7)
}
  0x10   :  { %s184_s22 = smov 128   ;;  %s185_s23 = smov 8  }
  0x11   :  { %21 = dma.hbm_to_vmem [thread:$0]  %s243_s0, 512, %s16_s13, [#allocation3], %s184_s22, %s184_s22, %s185_s23  }
  0x12   :  { %179 = dma.done.wait [#allocation3], 512  }
  0x13   :  { %180 = vsyncadd [#allocation3], 4294966784  ;;  %v29_v0 = vld [vmem:[#allocation2] sm:$0xff]  ;;  %v31_v1 = vld [vmem:[#allocation2 + $0x10] sm:$0xff]  ;;  %s186_s29 = smov [#allocation5]  }
  0x14   :  { %33 = vadd.xlane.f32.xlu0 %v29_v0  ;;  %37 = vadd.xlane.f32.xlu1 %v31_v1  ;;  %v30_v2 = vld [vmem:[#allocation2 + $0x8] sm:$0xff]  ;;  %v32_v3 = vld [vmem:[#allocation2 + $0x18] sm:$0xff]  ;;  %v121_v33 = vld [vmem:[%s244_s1] ss:$0 sm:$0xff]  ;;  %s109_s1 = sshll.u32 %s186_s29, 4  ;;  %s110_s1 = int_to_ptr.vmem [resolvable:$true] %s109_s1 }
  0x15   :  { %v122_v35 = vld [vmem:[%s245_s2] ss:$0 sm:$0xff]  ;;  %s157_s2 = scalar_lea.vmem %s110_s1, 512  ;;  %p162_p9 = scmp.lt.s32.totalorder %s110_s1, %s110_s1 }
  0x16   :  { %p158_p8 = scmp.ne.s32.totalorder %s110_s1, %s157_s2  ;;  %p163_p10 = scmp.lt.s32.totalorder %s157_s2, %s157_s2 }
  0x18   :  { %35 = vadd.xlane.f32.xlu0 %v30_v2  ;;  %39 = vadd.xlane.f32.xlu1 %v32_v3  ;;  %p164_p11 = por %p163_p10, %p162_p9 }
  0x1a   :  { %p165_p12 = pnand %p164_p11, %p158_p8 }
  0xa1   :  { %v34_v4 = vpop.xlane.xlu0 %33  ;;  %v38_v5 = vpop.xlane.xlu1 %37 }
  0xa2   :  { %v42_v6 = vmul.f32 0.0078125, %v34_v4  ;;  %v44_v7 = vmul.f32 0.0078125, %v38_v5 }
  0xa4   :  { %v46_v8 = vsub.f32 %v29_v0, %v42_v6  ;;  %v48_v9 = vsub.f32 %v31_v1, %v44_v7 }
  0xa5   :  { %v36_v10 = vpop.xlane.xlu0 %35  ;;  %v40_v11 = vpop.xlane.xlu1 %39 }
  0xa6   :  { %v43_v12 = vmul.f32 0.0078125, %v36_v10  ;;  %v50_v13 = vmul.f32 %v46_v8, %v46_v8  ;;  %v45_v14 = vmul.f32 0.0078125, %v40_v11  ;;  %v52_v17 = vmul.f32 %v48_v9, %v48_v9 }
  0xa8   :  { %v47_v15 = vsub.f32 %v30_v2, %v43_v12  ;;  %54 = vadd.xlane.f32.xlu0 %v50_v13  ;;  %v49_v16 = vsub.f32 %v32_v3, %v45_v14 }
  0xaa   :  { %v51_v18 = vmul.f32 %v47_v15, %v47_v15  ;;  %v53_v19 = vmul.f32 %v49_v16, %v49_v16 }
  0xac   :  { %58 = vadd.xlane.f32.xlu0 %v52_v17  ;;  %56 = vadd.xlane.f32.xlu1 %v51_v18 }
  0xb0   :  { %60 = vadd.xlane.f32.xlu1 %v53_v19 }
 0x135   :  { %v55_v20 = vpop.xlane.xlu0 %54 }
 0x136   :  { %v62_v21 = vmul.f32 0.0078125, %v55_v20 }
 0x138   :  { %v66_v22 = vadd.f32 1e-05, %v62_v21 }
 0x139   :  { %v57_v23 = vpop.xlane.xlu1 %56  ;;  %v59_v24 = vpop.xlane.xlu0 %58 }
 0x13a   :  { %127 = vrsqrt.f32 %v66_v22  ;;  %v63_v25 = vmul.f32 0.0078125, %v57_v23  ;;  %v64_v26 = vmul.f32 0.0078125, %v59_v24 }
 0x13c   :  { %v67_v27 = vadd.f32 1e-05, %v63_v25  ;;  %v68_v28 = vadd.f32 1e-05, %v64_v26 }
 0x13d   :  { %v61_v29 = vpop.xlane.xlu1 %60 }
 0x13e   :  { %129 = vrsqrt.f32 %v67_v27  ;;  %v65_v30 = vmul.f32 0.0078125, %v61_v29 }
 0x13f   :  { %131 = vrsqrt.f32 %v68_v28 }
 0x140   :  { %v69_v31 = vadd.f32 1e-05, %v65_v30 }
 0x142   :  { %133 = vrsqrt.f32 %v69_v31 }
 0x144   :  { %v128_v32 = vpop.eup %127 }
 0x145   :  { %v74_v34 = vmul.f32 %v128_v32, %v46_v8 }
 0x147   :  { %v85_v36 = vmul.f32 %v121_v33, %v74_v34 }
 0x148   :  { %v130_v37 = vpop.eup %129 }
 0x149   :  { %v132_v38 = vpop.eup %131  ;;  %v75_v39 = vmul.f32 %v130_v37, %v47_v15  ;;  %v96_v40 = vadd.f32 %v122_v35, %v85_v36 }
 0x14a   :  { %v76_v41 = vmul.f32 %v132_v38, %v48_v9 }
 0x14b   :  { %v86_v42 = vmul.f32 %v121_v33, %v75_v39  ;;  %100 = vst [vmem:[#allocation5] sm:$0xff] %v96_v40 }
 0x14c   :  { %v134_v43 = vpop.eup %133  ;;  %v87_v44 = vmul.f32 %v121_v33, %v76_v41 }
 0x14d   :  { %v77_v45 = vmul.f32 %v134_v43, %v49_v16  ;;  %v97_v46 = vadd.f32 %v122_v35, %v86_v42 }
 0x14e   :  { %v98_v47 = vadd.f32 %v122_v35, %v87_v44 }
 0x14f   :  { %v88_v48 = vmul.f32 %v121_v33, %v77_v45  ;;  %101 = vst [vmem:[#allocation5 + $0x8] sm:$0xff] %v97_v46 }
 0x150   :  { %102 = vst [vmem:[#allocation5 + $0x10] sm:$0xff] %v98_v47 }
 0x151   :  { %v99_v49 = vadd.f32 %v122_v35, %v88_v48 }
 0x153   :  { %103 = vst [vmem:[#allocation5 + $0x18] sm:$0xff] %v99_v49 }
 0x154   :  { %168 = shalt.err (!%p165_p12)
}
 0x155   :  { %s169_s5 = scalar_lea.hbm %s246_s3, 512 }
 0x156   :  { %p170_p13 = scmp.ne.s32.totalorder %s246_s3, %s169_s5  ;;  %p173_p0 = scmp.lt.u32.totalorder %s169_s5, %s246_s3 }
 0x158   :  { %p175_p1 = pnand %p173_p0, %p170_p13 }
 0x15a   :  { %178 = shalt.err (!%p175_p1)
}
 0x15b   :  { %115 = dma.vmem_to_hbm [thread:$0]  %s110_s1, 512, %s246_s3, [#allocation4], %s184_s22, %s184_s22, %s185_s23  }
 0x15c   :  { %181 = dma.done.wait [#allocation4], 512  }
 0x15d   :  { %182 = vsyncadd [#allocation4], 4294966784 }
 0x15e   :  { %119 = vsyncpa [#allocation3], 1 }
 0x15f   :  { %120 = vsyncpa [#allocation4], 1 }

</bundles_post_ra>
